<compile_context>
chip_gen: v6e
topology: v6e:2x2x1
jax: 0.10.0
libtpu: 0.0.40
codegen_flags: <defaults>
</compile_context>

<pallas_src>
import functools

import jax
import jax.numpy as jnp
from jax.experimental import pallas as pl
from jax.experimental.pallas import tpu as pltpu

V_TH = 0.5            # BrainCog BaseNode / IFNode default threshold
N_IN = 24             # mirror / pain populations
N_IFG = 50            # IFG population
N_SMA = 10            # SMA population
N_M1 = 10             # M1 population
LANES = 128           # lane-dense slab width (unmasked full-lane stores)

# Column layout of the packed weight / post-synaptic spike slabs.
IFG_LO, IFG_HI = 0, N_IFG                        # 0:50
SMA_LO, SMA_HI = N_IFG, N_IFG + N_SMA            # 50:60
M1_LO, M1_HI = SMA_HI, SMA_HI + N_M1             # 60:70


def _if_fire(current, dtype):
    """IF neuron with fresh state: v = 0 + current, spike where v >= threshold.

    Direct mask->dtype cast (no f32 select then pack): fewer VPU ops on v5e.
    """
    return (current >= V_TH).astype(dtype)


def _forward_step(x1, x2, w_m, w_p, input_gain, dw_dtype, spk_dtype):
    """Core of one BAESNN forward step on 2-D activations.

    x1, x2 : (B, 24) f32      mirror / pain input spike trains
    w_m    : (24, 128) bf16   mirror rows of packed [IFG | SMA | M1-dup] weights
    w_p    : (24, 128) bf16   pain rows
    Returns (dw_mirror (24,128), dw_pain (24,128), spikes (B,128)).
    """
    bf16, f32 = jnp.bfloat16, jnp.float32
    # connection0/3 = gain*I  ->  IF(x @ gain*I) == IF(gain*x): VPU compare only.
    s_m_f = _if_fire(input_gain * x1, f32)                       # (B, 24)
    s_p_f = _if_fire(input_gain * x2, f32)                       # (B, 24)
    s_m, s_p = s_m_f.astype(bf16), s_p_f.astype(bf16)
    # Materialize transposed pre-spikes BEFORE the forward matmuls so the XLU
    # transposes overlap the MXU passes instead of sitting on the critical path.
    s_m_t = s_m_f.T.astype(bf16)                                 # (24, B)
    s_p_t = s_p_f.T.astype(bf16)                                 # (24, B)
    # Forward: mirror/pain -> {IFG | SMA | M1-dup} packed into 128 lanes.
    i_post = (jnp.dot(s_m, w_m, preferred_element_type=f32)
              + jnp.dot(s_p, w_p, preferred_element_type=f32))   # (B, 128)
    s_post_f = _if_fire(i_post, f32)
    s_post = s_post_f.astype(bf16)
    # STDP: batch-summed outer products pre^T @ post (first step: trace == pre).
    dw_m = jnp.dot(s_m_t, s_post, preferred_element_type=f32).astype(dw_dtype)
    dw_p = jnp.dot(s_p_t, s_post, preferred_element_type=f32).astype(dw_dtype)
    return dw_m, dw_p, s_post_f.astype(spk_dtype)


def baesnn_kernel(x1_ref, x2_ref, w_ref, dw_ref, spk_ref, *, input_gain):
    """Flat single-step kernel (no grid).

    x1_ref/x2_ref: (B, 24) f32; w_ref: (2, 24, 128) bf16 packed weights.
    dw_ref : (2, 24, 128)  [0]=mirror-pre rows, [1]=pain-pre rows;
             cols 0:50 = IFG post, 50:60 = SMA post (rest ignored).
    spk_ref: (B, 128)  cols 0:50 = IFG, 50:60 = SMA, 60:70 = M1, rest 0.
    """
    dw_m, dw_p, spk = _forward_step(
        x1_ref[...], x2_ref[...], w_ref[0], w_ref[1],
        input_gain, dw_ref.dtype, spk_ref.dtype)
    dw_ref[0] = dw_m
    dw_ref[1] = dw_p
    spk_ref[...] = spk


def baesnn_steps_kernel(x1_ref, x2_ref, w_ref, dw_ref, spk_ref, *, input_gain):
    """Gridded multi-step kernel: one grid step == one independent forward step."""
    dw_m, dw_p, spk = _forward_step(
        x1_ref[0], x2_ref[0], w_ref[0], w_ref[1],
        input_gain, dw_ref.dtype, spk_ref.dtype)
    dw_ref[0, 0] = dw_m
    dw_ref[0, 1] = dw_p
    spk_ref[0] = spk


def make_weights():
    """The seven connection matrices exactly as in BAESNN.__init__ (f32)."""
    w0 = 6.0 * jnp.eye(N_IN, dtype=jnp.float32)                       # con_matrix0
    w1 = jnp.zeros((N_IN, N_IFG), jnp.float32)                        # con_matrix1
    w1 = w1.at[0:12, 0:25].set(2.0)
    w1 = w1.at[12:24, 25:50].set(2.0)
    w2 = jnp.zeros((N_IN, N_IFG), jnp.float32)                        # con_matrix2
    w3 = 6.0 * jnp.eye(N_IN, dtype=jnp.float32)                       # con_matrix3
    w4 = jnp.zeros((N_IN, N_SMA), jnp.float32)                        # con_matrix4
    w4 = w4.at[0:12, 0:5].set(2.0)
    w4 = w4.at[12:24, 5:10].set(2.0)
    w5 = jnp.zeros((N_IN, N_SMA), jnp.float32)                        # con_matrix5
    w6 = 6.0 * jnp.eye(N_M1, dtype=jnp.float32)                       # con_matrix6
    return w0, w1, w2, w3, w4, w5, w6


def pack_weights(w0, w1, w2, w3, w4, w5, w6):
    """Statically pack the 7 connection matrices into one (2, 24, 128) bf16 slab.

    Relies on (and asserts) the module's structure:
      * w0 = g*I, w3 = g*I  -> pre-synaptic spikes are IF(g*x), no matmul.
      * w6 = g6*I with g6 >= V_TH and SMA spikes binary -> s_m1 == s_sma, so the
        M1 pathway is a duplicate of the SMA weight columns.
    All packed values are small integers ({0, 2}), exactly representable in bf16.
    """
    gain = float(w0[0, 0])
    assert jnp.allclose(w0, gain * jnp.eye(N_IN)), "con_matrix0 must be gain*I"
    assert jnp.allclose(w3, gain * jnp.eye(N_IN)), "con_matrix3 must be gain*I"
    g6 = float(w6[0, 0])
    assert g6 >= V_TH and jnp.allclose(w6, g6 * jnp.eye(N_M1)), \
        "con_matrix6 must be g*I with g >= V_TH"

    w = jnp.zeros((2, N_IN, LANES), jnp.float32)
    w = w.at[0, :, IFG_LO:IFG_HI].set(w1)        # mirror -> IFG
    w = w.at[1, :, IFG_LO:IFG_HI].set(w2)        # pain   -> IFG
    w = w.at[0, :, SMA_LO:SMA_HI].set(w4)        # mirror -> SMA
    w = w.at[1, :, SMA_LO:SMA_HI].set(w5)        # pain   -> SMA
    w = w.at[0, :, M1_LO:M1_HI].set(w4)          # duplicated SMA cols -> M1 spikes
    w = w.at[1, :, M1_LO:M1_HI].set(w5)
    return w.astype(jnp.bfloat16), gain


def _dw_dtype_for_batch(b):
    # bf16 dw counts are exact up to 256 per synapse (review caveat); else f32.
    return jnp.bfloat16 if b <= 256 else jnp.float32


@functools.partial(jax.jit, static_argnames=("input_gain",))
def baesnn_forward(x1, x2, w_packed, *, input_gain):
    """One forward step. Returns the two fused lane-dense slabs (no re-slicing)."""
    b = x1.shape[0]
    vmem = pl.BlockSpec(memory_space=pltpu.MemorySpace.VMEM)
    dw_slab, spk_slab = pl.pallas_call(
        functools.partial(baesnn_kernel, input_gain=input_gain),
        out_shape=(
            jax.ShapeDtypeStruct((2, N_IN, LANES), _dw_dtype_for_batch(b)),
            jax.ShapeDtypeStruct((b, LANES), jnp.bfloat16),
        ),
        in_specs=[vmem, vmem, vmem],
        out_specs=(vmem, vmem),
    )(x1, x2, w_packed)
    return dw_slab, spk_slab


@functools.partial(jax.jit, static_argnames=("input_gain",))
def baesnn_forward_steps(x1_seq, x2_seq, w_packed, *, input_gain):
    """T independent forward steps fused into one pallas_call (grid over T).

    The packed weight stays VMEM-resident across the grid (constant index_map);
    the step axis is "parallel" so v7x shards it across its two TensorCores.
    """
    t, b, _ = x1_seq.shape
    dw_dtype = _dw_dtype_for_batch(b)
    grid_spec = pltpu.PrefetchScalarGridSpec(
        num_scalar_prefetch=0,
        grid=(t,),
        in_specs=[
            pl.BlockSpec((1, b, N_IN), lambda i: (i, 0, 0)),
            pl.BlockSpec((1, b, N_IN), lambda i: (i, 0, 0)),
            pl.BlockSpec((2, N_IN, LANES), lambda i: (0, 0, 0)),   # weight resident
        ],
        out_specs=(
            pl.BlockSpec((1, 2, N_IN, LANES), lambda i: (i, 0, 0, 0)),
            pl.BlockSpec((1, b, LANES), lambda i: (i, 0, 0)),
        ),
    )
    dw_slabs, spk_slabs = pl.pallas_call(
        functools.partial(baesnn_steps_kernel, input_gain=input_gain),
        out_shape=(
            jax.ShapeDtypeStruct((t, 2, N_IN, LANES), dw_dtype),
            jax.ShapeDtypeStruct((t, b, LANES), jnp.bfloat16),
        ),
        grid_spec=grid_spec,
        compiler_params=pltpu.CompilerParams(dimension_semantics=("parallel",)),
    )(x1_seq, x2_seq, w_packed)
    return dw_slabs, spk_slabs


def unpack_outputs(dw_slab, spk_slab):
    """Lazy consumer-side slicing back into the module's output tuple.

    Accepts single-step slabs ((2,24,128),(B,128)) or multi-step slabs with a
    leading T axis. Kept out of the jitted hot path on purpose.
    """
    dw_p_i = (dw_slab[..., 0, :, IFG_LO:IFG_HI], dw_slab[..., 1, :, IFG_LO:IFG_HI])
    dw_p_s = (dw_slab[..., 0, :, SMA_LO:SMA_HI], dw_slab[..., 1, :, SMA_LO:SMA_HI])
    out_ifg = spk_slab[..., IFG_LO:IFG_HI]
    out_sma = spk_slab[..., SMA_LO:SMA_HI]
    out_m1 = spk_slab[..., M1_LO:M1_HI]
    return dw_p_i, dw_p_s, out_ifg, out_sma, out_m1


def _reference(x1, x2, weights):
    """Plain-JAX reference of the original (unpacked) module semantics."""
    w0, w1, w2, w3, w4, w5, w6 = weights
    f32 = jnp.float32
    s_m = (x1 @ w0 >= V_TH).astype(f32)
    s_p = (x2 @ w3 >= V_TH).astype(f32)
    ref_ifg = ((s_m @ w1 + s_p @ w2) >= V_TH).astype(f32)
    ref_sma = ((s_m @ w4 + s_p @ w5) >= V_TH).astype(f32)
    ref_m1 = ((ref_sma @ w6) >= V_TH).astype(f32)
    return s_m, s_p, ref_ifg, ref_sma, ref_m1


if __name__ == "__main__":
    key = jax.random.PRNGKey(0)
    k1, k2, k3, k4 = jax.random.split(key, 4)
    batch, steps = 8, 4
    f32 = jnp.float32

    # Binary input spike trains for the mirror (x1) and pain (x2) populations.
    x1 = jax.random.bernoulli(k1, 0.5, (batch, N_IN)).astype(f32)
    x2 = jax.random.bernoulli(k2, 0.5, (batch, N_IN)).astype(f32)

    weights = make_weights()
    w_packed, gain = pack_weights(*weights)

    # ---- single forward step (flat, no grid) ----
    dw_slab, spk_slab = baesnn_forward(x1, x2, w_packed, input_gain=gain)
    jax.block_until_ready((dw_slab, spk_slab))
    dw_p_i, dw_p_s, out_ifg, out_sma, out_m1 = unpack_outputs(dw_slab, spk_slab)

    s_m, s_p, ref_ifg, ref_sma, ref_m1 = _reference(x1, x2, weights)
    assert jnp.allclose(out_ifg.astype(f32), ref_ifg)
    assert jnp.allclose(out_sma.astype(f32), ref_sma)
    assert jnp.allclose(out_m1.astype(f32), ref_m1)
    assert jnp.allclose(dw_p_i[0].astype(f32), s_m.T @ ref_ifg)
    assert jnp.allclose(dw_p_i[1].astype(f32), s_p.T @ ref_ifg)
    assert jnp.allclose(dw_p_s[0].astype(f32), s_m.T @ ref_sma)
    assert jnp.allclose(dw_p_s[1].astype(f32), s_p.T @ ref_sma)

    # ---- multi-step fused path (one pallas_call for T steps, weight resident) ----
    x1_seq = jax.random.bernoulli(k3, 0.5, (steps, batch, N_IN)).astype(f32)
    x2_seq = jax.random.bernoulli(k4, 0.5, (steps, batch, N_IN)).astype(f32)
    dw_seq, spk_seq = baesnn_forward_steps(x1_seq, x2_seq, w_packed, input_gain=gain)
    jax.block_until_ready((dw_seq, spk_seq))

    for ts in range(steps):
        sm, sp, r_ifg, r_sma, r_m1 = _reference(x1_seq[ts], x2_seq[ts], weights)
        dpi, dps, oifg, osma, om1 = unpack_outputs(dw_seq[ts], spk_seq[ts])
        assert jnp.allclose(oifg.astype(f32), r_ifg)
        assert jnp.allclose(osma.astype(f32), r_sma)
        assert jnp.allclose(om1.astype(f32), r_m1)
        assert jnp.allclose(dpi[0].astype(f32), sm.T @ r_ifg)
        assert jnp.allclose(dpi[1].astype(f32), sp.T @ r_ifg)
        assert jnp.allclose(dps[0].astype(f32), sm.T @ r_sma)
        assert jnp.allclose(dps[1].astype(f32), sp.T @ r_sma)

    print("KERNEL_OK")
</pallas_src>

<mosaic_0001>
module attributes {stable_mosaic.version = 11 : i64} {
  func.func @baesnn_kernel(%arg0: memref<8x24xf32, #tpu.memory_space<vmem>>, %arg1: memref<8x24xf32, #tpu.memory_space<vmem>>, %arg2: memref<2x24x128xbf16, #tpu.memory_space<vmem>>, %arg3: memref<2x24x128xbf16, #tpu.memory_space<vmem>>, %arg4: memref<8x128xbf16, #tpu.memory_space<vmem>>) attributes {dimension_semantics = [], scalar_prefetch = 0 : i64, scratch_operands = 0 : i64, tpu.core_type = #tpu.core_type<tc>} {
    %c0 = arith.constant 0 : index
    %c0_0 = arith.constant 0 : index
    %0 = vector.load %arg0[%c0, %c0_0] : memref<8x24xf32, #tpu.memory_space<vmem>>, vector<8x24xf32>
    %c0_1 = arith.constant 0 : index
    %c0_2 = arith.constant 0 : index
    %1 = vector.load %arg1[%c0_1, %c0_2] : memref<8x24xf32, #tpu.memory_space<vmem>>, vector<8x24xf32>
    %c0_3 = arith.constant 0 : index
    %c0_4 = arith.constant 0 : index
    %c0_5 = arith.constant 0 : index
    %2 = vector.load %arg2[%c0_3, %c0_4, %c0_5] : memref<2x24x128xbf16, #tpu.memory_space<vmem>>, vector<1x24x128xbf16>
    %3 = vector.shape_cast %2 : vector<1x24x128xbf16> to vector<24x128xbf16>
    %c1 = arith.constant 1 : index
    %c0_6 = arith.constant 0 : index
    %c0_7 = arith.constant 0 : index
    %4 = vector.load %arg2[%c1, %c0_6, %c0_7] : memref<2x24x128xbf16, #tpu.memory_space<vmem>>, vector<1x24x128xbf16>
    %5 = vector.shape_cast %4 : vector<1x24x128xbf16> to vector<24x128xbf16>
    %cst = arith.constant 6.000000e+00 : f32
    %6 = vector.broadcast %cst : f32 to vector<8x24xf32>
    %7 = arith.mulf %6, %0 : vector<8x24xf32>
    %cst_8 = arith.constant 5.000000e-01 : f32
    %8 = vector.broadcast %cst_8 : f32 to vector<8x24xf32>
    %9 = arith.cmpf oge, %7, %8 : vector<8x24xf32>
    %10 = arith.extui %9 : vector<8x24xi1> to vector<8x24xi32>
    %11 = arith.sitofp %10 : vector<8x24xi32> to vector<8x24xf32>
    %cst_9 = arith.constant 6.000000e+00 : f32
    %12 = vector.broadcast %cst_9 : f32 to vector<8x24xf32>
    %13 = arith.mulf %12, %1 : vector<8x24xf32>
    %cst_10 = arith.constant 5.000000e-01 : f32
    %14 = vector.broadcast %cst_10 : f32 to vector<8x24xf32>
    %15 = arith.cmpf oge, %13, %14 : vector<8x24xf32>
    %16 = arith.extui %15 : vector<8x24xi1> to vector<8x24xi32>
    %17 = arith.sitofp %16 : vector<8x24xi32> to vector<8x24xf32>
    %18 = arith.truncf %11 : vector<8x24xf32> to vector<8x24xbf16>
    %19 = arith.truncf %17 : vector<8x24xf32> to vector<8x24xbf16>
    %20 = tpu.transpose %11, [1, 0] : vector<8x24xf32> -> vector<24x8xf32>
    %21 = arith.truncf %20 : vector<24x8xf32> to vector<24x8xbf16>
    %22 = tpu.transpose %17, [1, 0] : vector<8x24xf32> -> vector<24x8xf32>
    %23 = arith.truncf %22 : vector<24x8xf32> to vector<24x8xbf16>
    %cst_11 = arith.constant dense<0.000000e+00> : vector<8x128xf32>
    %24 = tpu.matmul %18, %3, %cst_11 {dimension_numbers = #tpu.dot_dimension_numbers<[1], [0], [0], [1], [0, 0, 1, 1], [], []>} : vector<8x24xbf16>, vector<24x128xbf16>, vector<8x128xf32> -> vector<8x128xf32>
    %cst_12 = arith.constant dense<0.000000e+00> : vector<8x128xf32>
    %25 = tpu.matmul %19, %5, %cst_12 {dimension_numbers = #tpu.dot_dimension_numbers<[1], [0], [0], [1], [0, 0, 1, 1], [], []>} : vector<8x24xbf16>, vector<24x128xbf16>, vector<8x128xf32> -> vector<8x128xf32>
    %26 = arith.addf %24, %25 : vector<8x128xf32>
    %cst_13 = arith.constant 5.000000e-01 : f32
    %27 = vector.broadcast %cst_13 : f32 to vector<8x128xf32>
    %28 = arith.cmpf oge, %26, %27 : vector<8x128xf32>
    %29 = arith.extui %28 : vector<8x128xi1> to vector<8x128xi32>
    %30 = arith.sitofp %29 : vector<8x128xi32> to vector<8x128xf32>
    %31 = arith.truncf %30 : vector<8x128xf32> to vector<8x128xbf16>
    %cst_14 = arith.constant dense<0.000000e+00> : vector<24x128xf32>
    %32 = tpu.matmul %21, %31, %cst_14 {dimension_numbers = #tpu.dot_dimension_numbers<[1], [0], [0], [1], [0, 0, 1, 1], [], []>} : vector<24x8xbf16>, vector<8x128xbf16>, vector<24x128xf32> -> vector<24x128xf32>
    %33 = arith.truncf %32 : vector<24x128xf32> to vector<24x128xbf16>
    %cst_15 = arith.constant dense<0.000000e+00> : vector<24x128xf32>
    %34 = tpu.matmul %23, %31, %cst_15 {dimension_numbers = #tpu.dot_dimension_numbers<[1], [0], [0], [1], [0, 0, 1, 1], [], []>} : vector<24x8xbf16>, vector<8x128xbf16>, vector<24x128xf32> -> vector<24x128xf32>
    %35 = arith.truncf %34 : vector<24x128xf32> to vector<24x128xbf16>
    %36 = arith.truncf %30 : vector<8x128xf32> to vector<8x128xbf16>
    %c0_16 = arith.constant 0 : index
    %c0_17 = arith.constant 0 : index
    %c0_18 = arith.constant 0 : index
    %37 = vector.load %arg3[%c0_16, %c0_17, %c0_18] : memref<2x24x128xbf16, #tpu.memory_space<vmem>>, vector<1x24x128xbf16>
    %38 = vector.shape_cast %37 : vector<1x24x128xbf16> to vector<24x128xbf16>
    %39 = vector.shape_cast %33 : vector<24x128xbf16> to vector<1x24x128xbf16>
    tpu.vector_store %arg3[%c0_16, %c0_17, %c0_18], %39 {strides = array<i32>} : memref<2x24x128xbf16, #tpu.memory_space<vmem>>, vector<1x24x128xbf16>,
    %c1_19 = arith.constant 1 : index
    %c0_20 = arith.constant 0 : index
    %c0_21 = arith.constant 0 : index
    %40 = vector.load %arg3[%c1_19, %c0_20, %c0_21] : memref<2x24x128xbf16, #tpu.memory_space<vmem>>, vector<1x24x128xbf16>
    %41 = vector.shape_cast %40 : vector<1x24x128xbf16> to vector<24x128xbf16>
    %42 = vector.shape_cast %35 : vector<24x128xbf16> to vector<1x24x128xbf16>
    tpu.vector_store %arg3[%c1_19, %c0_20, %c0_21], %42 {strides = array<i32>} : memref<2x24x128xbf16, #tpu.memory_space<vmem>>, vector<1x24x128xbf16>,
    %c0_22 = arith.constant 0 : index
    %c0_23 = arith.constant 0 : index
    %43 = vector.load %arg4[%c0_22, %c0_23] : memref<8x128xbf16, #tpu.memory_space<vmem>>, vector<8x128xbf16>
    tpu.vector_store %arg4[%c0_22, %c0_23], %36 {strides = array<i32>} : memref<8x128xbf16, #tpu.memory_space<vmem>>, vector<8x128xbf16>,
    return
  }
}

</mosaic_0001>

<bundles_post_ra>
// kernel: baesnn_forward.1
= control target key start
LH: loop header
LB: loop body
LE: loop exit
PB: predicated region body
PF: predicated region fallthrough
CT: control target
= control target key end

     0   :  { %10 = vsyncpa [#allocation3], 0  ;;  %s723_s0 = inlined_call_operand.hbm [shape: f32[8,24], index: 0, kind: input, shape index: {}]   ;;  %s724_s1 = inlined_call_operand.hbm [shape: f32[8,24], index: 1, kind: input, shape index: {}]   ;;  %s725_s2 = inlined_call_operand.hbm [shape: bf16[2,24,128], index: 2, kind: input, shape index: {}]   ;;  %s726_s3 = inlined_call_operand.hbm [shape: bf16[2,24,128], index: 3, kind: output, shape index: {0}]   ;;  %s727_s4 = inlined_call_operand.hbm [shape: bf16[8,128], index: 4, kind: output, shape index: {1}]  }
   0x1   :  { %11 = vsyncpa [#allocation6], 0 }
   0x2   :  { %12 = vsyncpa [#allocation4], 0 }
   0x3   :  { %13 = vsyncpa [#allocation10], 0  ;;  %s659_s15 = smov [#allocation5]   ;;  %s660_s17 = smov [#allocation2]  }
   0x4   :  { %s30_s16 = sshll.u32 %s659_s15, 4  ;;  %s20_s18 = sshll.u32 %s660_s17, 4  ;;  %s31_s16 = int_to_ptr.vmem [resolvable:$true] %s30_s16  ;;  %s21_s18 = int_to_ptr.vmem [resolvable:$true] %s20_s18 }
   0x5   :  { %s559_s19 = scalar_lea.vmem %s31_s16, 128  ;;  %p564_p1 = scmp.lt.s32.totalorder %s31_s16, %s31_s16 }
   0x6   :  { %p560_p0 = scmp.ne.s32.totalorder %s31_s16, %s559_s19  ;;  %p565_p2 = scmp.lt.s32.totalorder %s559_s19, %s559_s19 }
   0x8   :  { %p566_p3 = por %p565_p2, %p564_p1 }
   0xa   :  { %p567_p4 = pnand %p566_p3, %p560_p0 }
   0xc   :  { %570 = shalt.err (!%p567_p4)
}
   0xd   :  { %33 = dma.hbm_to_vmem [thread:$0]  %s724_s1, 128, %s31_s16, [#allocation6]  }
   0xe   :  { %s579_s22 = scalar_lea.vmem %s21_s18, 128  ;;  %p584_p6 = scmp.lt.s32.totalorder %s21_s18, %s21_s18 }
   0xf   :  { %p580_p5 = scmp.ne.s32.totalorder %s21_s18, %s579_s22  ;;  %p585_p7 = scmp.lt.s32.totalorder %s579_s22, %s579_s22 }
  0x11   :  { %p586_p8 = por %p585_p7, %p584_p6 }
  0x13   :  { %p587_p9 = pnand %p586_p8, %p580_p5 }
  0x15   :  { %590 = shalt.err (!%p587_p9)
}
  0x16   :  { %23 = dma.hbm_to_vmem [thread:$0]  %s723_s0, 128, %s21_s18, [#allocation3]  }
  0x17   :  { %s661_s25 = smov [#allocation7]  }
  0x18   :  { %s39_s26 = sshll.u32 %s661_s25, 4  ;;  %s40_s26 = int_to_ptr.vmem [resolvable:$true] %s39_s26 }
  0x19   :  { %s599_s27 = scalar_lea.vmem %s40_s26, 384  ;;  %p604_p11 = scmp.lt.s32.totalorder %s40_s26, %s40_s26 }
  0x1a   :  { %p600_p10 = scmp.ne.s32.totalorder %s40_s26, %s599_s27  ;;  %p605_p12 = scmp.lt.s32.totalorder %s599_s27, %s599_s27 }
  0x1c   :  { %p606_p13 = por %p605_p12, %p604_p11 }
  0x1e   :  { %p607_p0 = pnand %p606_p13, %p600_p10 }
  0x20   :  { %610 = shalt.err (!%p607_p0)
}
  0x21   :  { %s662_s1 = smov 64   ;;  %s663_s28 = smov 4  }
  0x22   :  { %45 = dma.hbm_to_vmem [thread:$0]  %s725_s2, 384, %s40_s26, [#allocation6], %s662_s1, %s662_s1, %s663_s28  }
  0x23   :  { %651 = dma.done.wait [#allocation3], 128  }
  0x24   :  { %652 = vsyncadd [#allocation3], 4294967168 }
  0x25   :  { %653 = dma.done.wait [#allocation6], 512  }
  0x26   :  { %654 = vsyncadd [#allocation6], 4294966784  ;;  %v664_v0 = vmov 0.0   ;;  %vm665_vm0 = vmmov 0   ;;  %vm156_vm1 = vcmask 1043456   ;;  %v549_v5 = vld [vmem:[#allocation7 + $0xc] sm:$0xff]  }
  0x27   :  { %491 = vmatprep.subr.bf16.mxu0 %v664_v0  ;;  %499 = vmatprep.subr.bf16.mxu1 %v664_v0  ;;  %v547_v1 = vld [vmem:[#allocation7 + $0x14] ss:$0 sps:$4 sm:$0xff]   ;;  %v548_v2 = vld [vmem:[#allocation7 + $0x8] ss:$0 sps:$4 sm:$0xff]   ;;  %v57_v6 = vld [vmem:[#allocation5] sm:$0xff]  ;;  %vm152_vm4 = vcmask 195584  }
  0x28   :  { %495 = vmatprep.mubr.msk.bf16.mxu0 %vm665_vm0, %v664_v0  ;;  %503 = vmatprep.mubr.msk.bf16.mxu1 %vm665_vm0, %v664_v0  ;;  %v158_v3 = vsel %vm156_vm1, %v547_v1, 0  ;;  %v213_v4 = vsel %vm156_vm1, %v548_v2, 0  ;;  %v56_v7 = vld [vmem:[#allocation2] sm:$0xff]  ;;  %v550_v8 = vld [vmem:[#allocation7] sm:$0xff]   ;;  %v69_v9 = vmul.f32 6.0, %v57_v6  ;;  %vm259_vm5 = vcmask 64512  }
  0x29   :  { %492 = vmatpush3.bf16.msra.mxu0 %v158_v3  ;;  %500 = vmatpush3.bf16.msra.mxu1 %v213_v4  ;;  %v65_v10 = vmul.f32 6.0, %v56_v7  ;;  %s666_s0 = smov [#allocation9]  }
  0x2a   :  { %493 = vmatprep.subr.bf16.mxu0 %v664_v0  ;;  %501 = vmatprep.subr.bf16.mxu1 %v664_v0  ;;  %vm70_vm2 = vcmp.ge.f32.partialorder %v69_v9, 0.5  ;;  %s423_s2 = sshll.u32 %s666_s0, 4  ;;  %s424_s2 = int_to_ptr.vmem [resolvable:$true] %s423_s2 }
  0x2b   :  { %vm66_vm3 = vcmp.ge.f32.partialorder %v65_v10, 0.5  ;;  %v438_v11 = vsel %vm70_vm2, 1.0, %v664_v0  ;;  %s611_s5 = scalar_lea.vmem %s424_s2, 64  ;;  %p616_p2 = scmp.lt.s32.totalorder %s424_s2, %s424_s2 }
  0x2c   :  { %v437_v12 = vsel %vm66_vm3, 1.0, %v664_v0  ;;  %v74_v13 = vpack.c.bf16 %v438_v11, %v438_v11  ;;  %p612_p1 = scmp.ne.s32.totalorder %s424_s2, %s611_s5  ;;  %p617_p3 = scmp.lt.s32.totalorder %s611_s5, %s611_s5 }
  0x2d   :  { %494 = vmatpush3.bf16.msra.mxu0 %v549_v5  ;;  %502 = vmatpush3.bf16.msra.mxu1 %v550_v8  ;;  %v73_v14 = vpack.c.bf16 %v437_v12, %v437_v12  ;;  %v530_v15 = vpack.i.bf16 %v438_v11, %v437_v12 }
  0x2e   :  { %p618_p4 = por %p617_p3, %p616_p2 }
  0x2f   :  { %531 = vxpose.xlu0.b32.start.end [1/1] (short) (narrow) %v530_v15, 24 }
  0x30   :  { %496 = vmatmul.mubr.msk.bf16.vlgmr.msra.gmra.mxu0 %vm152_vm4, %v74_v13  ;;  %504 = vmatmul.mubr.msk.bf16.vlgmr.msra.gmra.mxu1 %vm152_vm4, %v73_v14  ;;  %p619_p5 = pnand %p618_p4, %p612_p1 }
  0xab   :  { %v532_v16 = vpop.trf.xlu0 }
  0xac   :  { %v536_v17 = vunpack.i.h.bf16 %v532_v16  ;;  %v533_v18 = vunpack.i.l.bf16 %v532_v16 }
  0xaf   :  { %v537_v19 = vpop.trf.xlu0 }
  0xb0   :  { %v541_v20 = vunpack.i.h.bf16 %v537_v19  ;;  %v538_v21 = vunpack.i.l.bf16 %v537_v19 }
  0xb2   :  { %v107_v22 = vpack.c.bf16 %v538_v21, %v533_v18  ;;  %v141_v23 = vpack.c.bf16 %v541_v20, %v536_v17 }
  0xb3   :  { %v542_v24 = vpop.trf.xlu0 }
  0xb4   :  { %509 = vmatprep.mubr.msk.bf16.mxu0 %vm259_vm5, %v107_v22  ;;  %515 = vmatprep.mubr.msk.bf16.mxu1 %vm259_vm5, %v141_v23  ;;  %v546_v31 = vunpack.i.h.bf16 %v542_v24  ;;  %v543_v32 = vunpack.i.l.bf16 %v542_v24 }
  0xb6   :  { %v142_v38 = vpack.c.bf16 %v546_v31, %v546_v31  ;;  %v108_v39 = vpack.c.bf16 %v543_v32, %v543_v32 }
  0xf0   :  { %v194_v25 = vpop.f32.mrf.mxu0  ;;  %v249_v26 = vpop.f32.mrf.mxu1 }
  0xf1   :  { %v250_v27 = vadd.f32 %v249_v26, %v194_v25 }
  0xf2   :  { %v497_v28 = vpop.f32.mrf.mxu0  ;;  %v505_v29 = vpop.f32.mrf.mxu1 }
  0xf3   :  { %vm255_vm6 = vcmp.ge.f32.partialorder %v250_v27, 0.5 }
  0xf4   :  { %v197_v30 = vpop.f32.mrf.mxu0  ;;  %v445_v33 = vsel %vm255_vm6, 1.0, %v664_v0  ;;  %v252_v34 = vpop.f32.mrf.mxu1 }
  0xf5   :  { %v258_v35 = vpack.c.bf16 %v445_v33, %v445_v33 }
  0xf6   :  { %v498_v36 = vpop.f32.mrf.mxu0  ;;  %v506_v37 = vpop.f32.mrf.mxu1 }
  0xf7   :  { %404 = vst [vmem:[#allocation9] sm:$0xf] %v258_v35  ;;  %519 = vmatprep.subr.msk.bf16.mxu0 %vm156_vm1, %v258_v35  ;;  %520 = vmatprep.subr.msk.bf16.mxu1 %vm156_vm1, %v258_v35  ;;  %v267_v40 = vsel %vm156_vm1, %v258_v35, 0 }
  0xf8   :  { %508 = vmatpush3.bf16.msra.mxu0 %v267_v40  ;;  %514 = vmatpush3.bf16.msra.mxu1 %v267_v40 }
  0xfb   :  { %510 = vmatmul.mubr.msk.bf16.vlgmr.msra.gmra.mxu0 %vm259_vm5, %v108_v39  ;;  %516 = vmatmul.mubr.msk.bf16.vlgmr.msra.gmra.mxu1 %vm259_vm5, %v142_v38 }
  0xfc   :  { %622 = shalt.err (!%p619_p5)
}
  0xfd   :  { %426 = dma.vmem_to_hbm [thread:$0]  %s424_s2, 64, %s727_s4, [#allocation10]  }
  0xfe   :  { %s667_s8 = smov [#allocation8]  }
  0xff   :  { %s410_s9 = sshll.u32 %s667_s8, 4  ;;  %s411_s9 = int_to_ptr.vmem [resolvable:$true] %s410_s9 }
 0x100   :  { %s631_s10 = scalar_lea.vmem %s411_s9, 384  ;;  %p636_p7 = scmp.lt.s32.totalorder %s411_s9, %s411_s9 }
 0x101   :  { %p632_p6 = scmp.ne.s32.totalorder %s411_s9, %s631_s10  ;;  %p637_p8 = scmp.lt.s32.totalorder %s631_s10, %s631_s10 }
 0x103   :  { %p638_p9 = por %p637_p8, %p636_p7 }
 0x105   :  { %p639_p10 = pnand %p638_p9, %p632_p6 }
 0x1bb   :  { %v511_v41 = vpop.f32.mrf.mxu0  ;;  %v517_v42 = vpop.f32.mrf.mxu1 }
 0x1bd   :  { %v303_v43 = vpop.f32.mrf.mxu0  ;;  %v359_v44 = vpop.f32.mrf.mxu1 }
 0x1be   :  { %v470_v45 = vpack.c.bf16 %v359_v44, %v511_v41 }
 0x1bf   :  { %v512_v46 = vpop.f32.mrf.mxu0  ;;  %v518_v47 = vpop.f32.mrf.mxu1 }
 0x1c0   :  { %477 = vst [vmem:[#allocation8 + $0x8] sm:$0xff] %v470_v45  }
 0x1c1   :  { %v306_v48 = vpop.f32.mrf.mxu0  ;;  %v362_v49 = vpop.f32.mrf.mxu1 }
 0x1c2   :  { %v465_v50 = vpack.c.bf16 %v306_v48, %v303_v43  ;;  %v475_v51 = vpack.c.bf16 %v517_v42, %v362_v49 }
 0x1c4   :  { %466 = vst [vmem:[#allocation8] sm:$0xff] %v465_v50   ;;  %478 = vst [vmem:[#allocation8 + $0x10] sm:$0xff] %v475_v51  }
 0x1c5   :  { %642 = shalt.err (!%p639_p10)
}
 0x1c6   :  { %416 = dma.vmem_to_hbm [thread:$0]  %s411_s9, 384, %s726_s3, [#allocation4], %s662_s1, %s662_s1, %s663_s28  }
 0x1c7   :  { %655 = dma.done.wait [#allocation4], 384  }
 0x1c8   :  { %656 = vsyncadd [#allocation4], 4294966912 }
 0x1c9   :  { %657 = dma.done.wait [#allocation10], 64  }
 0x1ca   :  { %658 = vsyncadd [#allocation10], 4294967232 }
 0x1cb   :  { %433 = vsyncpa [#allocation3], 1 }
 0x1cc   :  { %434 = vsyncpa [#allocation6], 1 }
 0x1cd   :  { %435 = vsyncpa [#allocation4], 1 }
 0x1ce   :  { %436 = vsyncpa [#allocation10], 1 }

</bundles_post_ra>
